<compile_context>
chip_gen: v6e
topology: v6e:2x2x1
jax: 0.10.0
libtpu: 0.0.40
codegen_flags: <defaults>
</compile_context>

<pallas_src>
import functools

import jax
import jax.numpy as jnp
from jax import lax
from jax.experimental import pallas as pl
from jax.experimental.pallas import tpu as pltpu


_MAX_BLOCK_B = 512                      # cap on sublane rows per tile


def _round_down(v: int, m: int) -> int:
    return (v // m) * m


def _select_vmem_budget():
    """Pick (vmem_limit_bytes, per-input-tile byte budget) from the local chip.

    Works for v5e/v6e (128 MiB physical) and v7x (64 MiB physical per TC);
    falls back to a conservative setting if detection is unavailable.
    """
    try:
        cap = int(pltpu.get_tpu_info().vmem_capacity_bytes)
    except Exception:
        cap = 64 * 1024 * 1024
    limit = min(48 * 1024 * 1024, (3 * cap) // 4)
    # 2x double-buffered input + 2x output tiles (+ small carry/halo) must fit
    # under `limit` with headroom for compiler-internal scratch.
    tile = max(512 * 1024, limit // 6)
    return limit, tile


# ---------------------------------------------------------------------------
# Kernels.  Each produces its output tile with a single lane-dense store:
#   prev = roll(x, 1) with column 0 replaced (reflect pad / carried sample)
#   y    = x - coef * prev
# roll uses the otherwise-idle XLU; the column-0 select is free VPU slack.
# ---------------------------------------------------------------------------

def _kernel_full_t(x_ref, o_ref, *, coef):
    """Whole time axis lives in one tile; only batch is (possibly) tiled."""
    x = x_ref[...]
    rolled = pltpu.roll(x, shift=1, axis=1)            # rolled[:, t] = x[:, t-1]
    lane = lax.broadcasted_iota(jnp.int32, x.shape, 1)
    prev = jnp.where(lane == 0, x[:, 1:2], rolled)     # reflect pad at t == 0
    o_ref[...] = x - coef * prev


def _kernel_tiled_carry(x_ref, o_ref, carry_ref, *, coef, block_t):
    """Time tiled sequentially ("arbitrary"); a VMEM scratch carries the last
    128 samples of the previous time tile (only its last lane is consumed)."""
    j = pl.program_id(1)
    x = x_ref[...]
    rolled = pltpu.roll(x, shift=1, axis=1)
    # carry is only *read* when j > 0 (select discards it at j == 0, so the
    # stale/uninitialized contents at j == 0 are never used).
    prev0 = jnp.where(j == 0, x[:, 1:2], carry_ref[:, 127:128])
    lane = lax.broadcasted_iota(jnp.int32, x.shape, 1)
    o_ref[...] = x - coef * jnp.where(lane == 0, prev0, rolled)
    carry_ref[...] = x[:, block_t - 128:block_t]


def _kernel_tiled_halo(x_ref, halo_ref, o_ref, *, coef):
    """Time tiles independent ("parallel"): a 128-lane halo input block maps to
    the last 128 samples of the previous time tile (contents unused at j==0)."""
    j = pl.program_id(1)
    x = x_ref[...]
    rolled = pltpu.roll(x, shift=1, axis=1)
    prev0 = jnp.where(j == 0, x[:, 1:2], halo_ref[:, 127:128])
    lane = lax.broadcasted_iota(jnp.int32, x.shape, 1)
    o_ref[...] = x - coef * jnp.where(lane == 0, prev0, rolled)


# ---------------------------------------------------------------------------
# Wrapper
# ---------------------------------------------------------------------------

def pre_emphasis(x: jax.Array, coef: float = 0.97, *,
                 block_b: int | None = None,
                 block_t: int | None = None) -> jax.Array:
    assert x.ndim == 2, "The number of dimensions of inputs tensor must be 2!"
    B, T = x.shape
    assert T >= 2, "reflect padding of width 1 requires T >= 2"
    itemsize = jnp.dtype(x.dtype).itemsize

    vmem_limit, tile_budget = _select_vmem_budget()

    # ---- batch tile: multiple of 8 sublanes (partial edges masked by Pallas),
    # ---- or the full dim when B < 8.
    if block_b is None:
        block_b = B if B < 8 else min(_round_down(B, 8), _MAX_BLOCK_B)
    else:
        block_b = min(block_b, B)
    if block_b != B:
        assert block_b % 8 == 0, "batch tile must be a multiple of 8 sublanes"

    # ---- time tile: lane-dense multiple of 128 filling the VMEM budget
    # ---- (accounting for sublane padding), or the full axis if it fits.
    rows_padded = ((max(block_b, 1) + 7) // 8) * 8
    if block_t is None:
        lane_budget = max(
            128, _round_down(tile_budget // (rows_padded * itemsize), 128))
        block_t = T if T <= lane_budget else lane_budget
    else:
        block_t = min(block_t, T)
    if block_t != T:
        assert block_t % 128 == 0 and block_t >= 128, \
            "time tile must be a multiple of 128 lanes (or the full axis)"

    grid_b = pl.cdiv(B, block_b)
    grid_t = pl.cdiv(T, block_t)
    out_shape = jax.ShapeDtypeStruct((B, T), x.dtype)

    # --------------------------------------------------------------- full T
    if grid_t == 1:
        kernel = functools.partial(_kernel_full_t, coef=coef)
        return pl.pallas_call(
            kernel,
            out_shape=out_shape,
            grid=(grid_b,),
            in_specs=[pl.BlockSpec((block_b, block_t), lambda i: (i, 0))],
            out_specs=pl.BlockSpec((block_b, block_t), lambda i: (i, 0)),
            compiler_params=pltpu.CompilerParams(
                dimension_semantics=("parallel",),
                vmem_limit_bytes=vmem_limit),
        )(x)

    # ----------------------------------------------- tiled T, carry variant
    # >= 2 batch tiles: megacore shards the parallel batch axis, so the time
    # axis can stay sequential and the scratch carry removes the halo re-read
    # plus its per-step DMA and double-buffered VMEM.
    if grid_b >= 2:
        kernel = functools.partial(_kernel_tiled_carry, coef=coef,
                                   block_t=block_t)
        return pl.pallas_call(
            kernel,
            out_shape=out_shape,
            grid=(grid_b, grid_t),
            in_specs=[pl.BlockSpec((block_b, block_t), lambda i, j: (i, j))],
            out_specs=pl.BlockSpec((block_b, block_t), lambda i, j: (i, j)),
            scratch_shapes=[pltpu.VMEM((block_b, 128), x.dtype)],
            compiler_params=pltpu.CompilerParams(
                dimension_semantics=("parallel", "arbitrary"),
                vmem_limit_bytes=vmem_limit),
        )(x)

    # ------------------------------------------------ tiled T, halo variant
    # Single batch tile: keep every time tile independent (128-lane halo block
    # instead of a carry) so the time axis can be "parallel" and both v7x
    # TensorCores stream HBM.  Halo re-read is only 128/block_t of the input.
    n128 = block_t // 128
    kernel = functools.partial(_kernel_tiled_halo, coef=coef)
    x_spec = pl.BlockSpec((block_b, block_t), lambda i, j: (i, j))
    halo_spec = pl.BlockSpec(
        (block_b, 128), lambda i, j: (i, jnp.maximum(j * n128 - 1, 0)))
    out_spec = pl.BlockSpec((block_b, block_t), lambda i, j: (i, j))
    return pl.pallas_call(
        kernel,
        out_shape=out_shape,
        grid=(grid_b, grid_t),
        in_specs=[x_spec, halo_spec],
        out_specs=out_spec,
        compiler_params=pltpu.CompilerParams(
            dimension_semantics=("parallel", "parallel"),
            vmem_limit_bytes=vmem_limit),
    )(x, x)


def _reference(x: jax.Array, coef: float = 0.97) -> jax.Array:
    # Pure-JAX reference matching F.pad(..., 'reflect') + conv1d([-coef, 1.0]).
    padded = jnp.concatenate([x[:, 1:2], x], axis=1)   # reflect pad left by 1
    return padded[:, 1:] - coef * padded[:, :-1]


if __name__ == "__main__":
    coef = 0.97
    k1, k2, k3, k4 = jax.random.split(jax.random.PRNGKey(0), 4)

    # 1) Full-T path (single time tile, batch-only grid).
    x1 = jax.random.normal(k1, (8, 256), dtype=jnp.float32)
    y1 = jax.block_until_ready(pre_emphasis(x1, coef))
    assert y1.shape == x1.shape and y1.dtype == x1.dtype
    assert jnp.allclose(y1, _reference(x1, coef), atol=1e-6, rtol=1e-6), \
        "mismatch vs reference (full-T path)"

    # 2) Carry path (grid_b >= 2, time sequential) with partial edge blocks on
    #    BOTH axes: B=12 (not a multiple of 8), T=600 (not a multiple of 128).
    x2 = jax.random.normal(k2, (12, 600), dtype=jnp.float32)
    y2 = jax.block_until_ready(pre_emphasis(x2, coef, block_b=8, block_t=256))
    assert y2.shape == x2.shape and y2.dtype == x2.dtype
    assert jnp.allclose(y2, _reference(x2, coef), atol=1e-6, rtol=1e-6), \
        "mismatch vs reference (carry path, partial edge blocks)"

    # 3) Halo path (grid_b == 1, time tiles independent / both axes parallel),
    #    with a non-128-aligned T giving a partial trailing time tile.
    x3 = jax.random.normal(k3, (8, 2000), dtype=jnp.float32)
    y3 = jax.block_until_ready(pre_emphasis(x3, coef, block_t=512))
    assert y3.shape == x3.shape and y3.dtype == x3.dtype
    assert jnp.allclose(y3, _reference(x3, coef), atol=1e-6, rtol=1e-6), \
        "mismatch vs reference (halo path)"

    # 4) Default tile selection on a typical small-waveform aspect ratio.
    x4 = jax.random.normal(k4, (4, 4096), dtype=jnp.float32)
    y4 = jax.block_until_ready(pre_emphasis(x4, coef))
    assert y4.shape == x4.shape and y4.dtype == x4.dtype
    assert jnp.allclose(y4, _reference(x4, coef), atol=1e-6, rtol=1e-6), \
        "mismatch vs reference (default tiling)"

    print("KERNEL_OK")
</pallas_src>

<mosaic_0001>
module attributes {stable_mosaic.version = 11 : i64} {
  func.func @_kernel_full_t(%arg0: i32, %arg1: memref<8x256xf32, #tpu.memory_space<vmem>>, %arg2: memref<8x256xf32, #tpu.memory_space<vmem>>) attributes {dimension_semantics = [#tpu.dimension_semantics<parallel>], iteration_bounds = array<i64: 1>, scalar_prefetch = 0 : i64, scratch_operands = 0 : i64, tpu.core_type = #tpu.core_type<tc>, window_params = [{transform_indices = @transform_0, window_bounds = array<i64: 8, 256>}, {transform_indices = @transform_1, window_bounds = array<i64: 8, 256>}]} {
    %c0 = arith.constant 0 : index
    %c0_0 = arith.constant 0 : index
    %0 = vector.load %arg1[%c0, %c0_0] : memref<8x256xf32, #tpu.memory_space<vmem>>, vector<8x256xf32>
    %c1_i32 = arith.constant 1 : i32
    %1 = tpu.dynamic_rotate %0 by %c1_i32 dim 1 : vector<8x256xf32>, i32 -> vector<8x256xf32>
    %2 = tpu.iota {dimensions = array<i32: 1>} : vector<8x256xi32>
    %c0_i32 = arith.constant 0 : i32
    %3 = vector.broadcast %c0_i32 : i32 to vector<8x256xi32>
    %4 = arith.cmpi eq, %2, %3 : vector<8x256xi32>
    %5 = vector.extract_strided_slice %0 {offsets = [0, 1], sizes = [8, 1], strides = [1, 1]} : vector<8x256xf32> to vector<8x1xf32>
    %6 = vector.shape_cast %5 : vector<8x1xf32> to vector<8x1xf32>
    %7 = vector.broadcast %6 : vector<8x1xf32> to vector<8x256xf32>
    %8 = arith.select %4, %7, %1 : vector<8x256xi1>, vector<8x256xf32>
    %cst = arith.constant 9.700000e-01 : f32
    %9 = vector.broadcast %cst : f32 to vector<8x256xf32>
    %10 = arith.mulf %9, %8 : vector<8x256xf32>
    %11 = arith.subf %0, %10 : vector<8x256xf32>
    %c0_1 = arith.constant 0 : index
    %c0_2 = arith.constant 0 : index
    %12 = vector.load %arg2[%c0_1, %c0_2] : memref<8x256xf32, #tpu.memory_space<vmem>>, vector<8x256xf32>
    tpu.vector_store %arg2[%c0_1, %c0_2], %11 {strides = array<i32>} : memref<8x256xf32, #tpu.memory_space<vmem>>, vector<8x256xf32>,
    return
  }
  func.func @transform_0(%arg0: i32) -> (i32, i32) {
    %c0_i32 = arith.constant 0 : i32
    %c0_i32_0 = arith.constant 0 : i32
    return %arg0, %c0_i32 : i32, i32
  }
  func.func @transform_1(%arg0: i32) -> (i32, i32) {
    %c0_i32 = arith.constant 0 : i32
    %c0_i32_0 = arith.constant 0 : i32
    return %arg0, %c0_i32 : i32, i32
  }
}

</mosaic_0001>

<bundles_post_ra>
// kernel: tpu_custom_call.1
= control target key start
LH: loop header
LB: loop body
LE: loop exit
PB: predicated region body
PF: predicated region fallthrough
CT: control target
= control target key end

     0   :  { %6 = vsyncpa [#allocation3], 0  ;;  %s132_s0 = inlined_call_operand.hbm [shape: f32[8,256], index: 0, kind: input, shape index: {}]   ;;  %s133_s1 = inlined_call_operand.hbm [shape: f32[8,256], index: 1, kind: output, shape index: {}]  }
   0x1   :  { %7 = vsyncpa [#allocation4], 0  ;;  %s112_s6 = smov [#allocation2]  }
   0x2   :  { %s14_s7 = sshll.u32 %s112_s6, 4  ;;  %s15_s7 = int_to_ptr.vmem [resolvable:$true] %s14_s7 }
   0x3   :  { %s76_s8 = scalar_lea.vmem %s15_s7, 256  ;;  %p81_p1 = scmp.lt.s32.totalorder %s15_s7, %s15_s7 }
   0x4   :  { %p77_p0 = scmp.ne.s32.totalorder %s15_s7, %s76_s8  ;;  %p82_p2 = scmp.lt.s32.totalorder %s76_s8, %s76_s8 }
   0x6   :  { %p83_p3 = por %p82_p2, %p81_p1 }
   0x8   :  { %p84_p4 = pnand %p83_p3, %p77_p0 }
   0xa   :  { %87 = shalt.err (!%p84_p4)
}
   0xb   :  { %17 = dma.hbm_to_vmem [thread:$0]  %s132_s0, 256, %s15_s7, [#allocation3]  }
   0xc   :  { %108 = dma.done.wait [#allocation3], 256  }
   0xd   :  { %109 = vsyncadd [#allocation3], 4294967040  ;;  %v113_v0 = vmov 1   ;;  %v21_v1 = vld [vmem:[#allocation2] sm:$0xff]  ;;  %v22_v2 = vld [vmem:[#allocation2 + $0x8] sm:$0xff]  ;;  %s114_s11 = smov 1   ;;  %v27_v3 = vlaneseq }
   0xe   :  { %67 = vset.pattern.permute.xlu0 %v113_v0  ;;  %25 = vrot.lane.b32.xlu1 %v22_v2, %s114_s11  ;;  %s115_s0 = smov [#allocation5]  }
   0xf   :  { %37 = vperm.xlu0 %67, %v21_v1   ;;  %v28_v4 = vand.u32 127, %v27_v3  ;;  %s54_s12 = sshll.u32 %s115_s0, 4  ;;  %s55_s12 = int_to_ptr.vmem [resolvable:$true] %s54_s12 }
  0x10   :  { %s88_s13 = scalar_lea.vmem %s55_s12, 256  ;;  %p93_p6 = scmp.lt.s32.totalorder %s55_s12, %s55_s12 }
  0x11   :  { %vm29_vm0 = vcmp.lt.s32.totalorder %v28_v4, 1  ;;  %vm33_vm1 = vcmp.eq.s32.totalorder %v28_v4, 0  ;;  %p89_p5 = scmp.ne.s32.totalorder %s55_s12, %s88_s13  ;;  %p94_p7 = scmp.lt.s32.totalorder %s88_s13, %s88_s13 }
  0x13   :  { %23 = vrot.lane.b32.xlu0 %v21_v1, %s114_s11  ;;  %p95_p8 = por %p94_p7, %p93_p6 }
  0x15   :  { %p96_p9 = pnand %p95_p8, %p89_p5 }
  0x80   :  { %v26_v6 = vpop.permute.xlu1 %25 }
  0x8a   :  { %v38_v5 = vpop.permute.xlu0 %37 }
  0x8e   :  { %v24_v7 = vpop.permute.xlu0 %23 }
  0x8f   :  { %v30_v8 = vsel %vm29_vm0, %v24_v7, %v26_v6  ;;  %v31_v9 = vsel %vm29_vm0, %v26_v6, %v24_v7 }
  0x90   :  { %v40_v10 = vsel %vm33_vm1, %v38_v5, %v31_v9  ;;  %v43_v11 = vmul.f32 0.97, %v30_v8 }
  0x91   :  { %v42_v12 = vmul.f32 0.97, %v40_v10 }
  0x92   :  { %v45_v13 = vsub.f32 %v22_v2, %v43_v11 }
  0x93   :  { %v44_v14 = vsub.f32 %v21_v1, %v42_v12 }
  0x94   :  { %47 = vst [vmem:[#allocation5 + $0x8] sm:$0xff] %v45_v13 }
  0x95   :  { %46 = vst [vmem:[#allocation5] sm:$0xff] %v44_v14 }
  0x96   :  { %99 = shalt.err (!%p96_p9)
}
  0x97   :  { %57 = dma.vmem_to_hbm [thread:$0]  %s55_s12, 256, %s133_s1, [#allocation4]  }
  0x98   :  { %110 = dma.done.wait [#allocation4], 256  }
  0x99   :  { %111 = vsyncadd [#allocation4], 4294967040 }
  0x9a   :  { %61 = vsyncpa [#allocation3], 1 }
  0x9b   :  { %62 = vsyncpa [#allocation4], 1 }

</bundles_post_ra>
